<compile_context>
chip_gen: v6e
topology: v6e:2x2x1
jax: 0.10.0
libtpu: 0.0.40
codegen_flags: <defaults>
</compile_context>

<pallas_src>
import functools

import jax
import jax.numpy as jnp
from jax.experimental import pallas as pl
from jax.experimental.pallas import tpu as pltpu


def _round_up(x, m):
    return ((x + m - 1) // m) * m


def _vmem_capacity_bytes():
    try:
        return int(pltpu.get_tpu_info().vmem_capacity_bytes)
    except Exception:                      # pragma: no cover
        return 64 << 20                    # most conservative (v7x per-TensorCore)


def _step_bytes(tm, tk, d_in, d_op):
    """Conservative per-pipeline-stage VMEM footprint (lane-padded, double-buffered)."""
    lane = 128
    d_l = max(d_in, lane)
    z_blk = tk * d_l * 2                   # bf16 source-message tile
    h1_blk = tm * d_l * 4                  # f32 dest h1 tile
    att_blk = tm * lane * 4                # f32 dest att tile (lane padding)
    adj_blk = tm * tk * 1                  # int8 adjacency tile
    out_blk = tm * d_op * 4
    w_blk = 2 * d_in * d_op * 4 + d_op * 4
    scratch = tm * lane * 4                # msg accumulator (k-tiled variant only)
    return 2 * (z_blk + h1_blk + att_blk + adj_blk + out_blk + w_blk) + scratch


def _fact_gcn_flat_kernel(z_ref, h1_ref, att_ref, adj_ref,
                          w2a_ref, w2b_ref, b2_ref, out_ref):
    """Full source-row slab per dst tile: no reduction axis, no scratch."""
    # msg = A @ z  -- both MXU operands bf16 (exact for 0/1 adjacency), f32 acc.
    adj = adj_ref[0].astype(jnp.bfloat16)
    msg = jnp.dot(adj, z_ref[0], preferred_element_type=jnp.float32)
    # apply_fc([msg, h1]) with W2 split along the concat axis:
    #   [msg, h1] @ W2^T = msg @ W2a + h1 @ W2b
    pre = (jnp.dot(msg, w2a_ref[...], preferred_element_type=jnp.float32)
           + jnp.dot(h1_ref[0], w2b_ref[...], preferred_element_type=jnp.float32)
           + b2_ref[...])
    out_ref[0] = att_ref[0] * jnp.maximum(pre, 0.0)      # lane-dense store


def _fact_gcn_reduce_kernel(z_ref, h1_ref, att_ref, adj_ref,
                            w2a_ref, w2b_ref, b2_ref, out_ref, acc_ref):
    """k-tiled source reduction with an f32 VMEM accumulator."""
    k = pl.program_id(2)

    @pl.when(k == 0)
    def _init():
        acc_ref[...] = jnp.zeros_like(acc_ref)

    adj = adj_ref[0].astype(jnp.bfloat16)                # int8 -> bf16, exact 0/1
    acc_ref[...] += jnp.dot(adj, z_ref[0], preferred_element_type=jnp.float32)

    @pl.when(k == pl.num_programs(2) - 1)
    def _finalize():
        pre = (jnp.dot(acc_ref[...], w2a_ref[...], preferred_element_type=jnp.float32)
               + jnp.dot(h1_ref[0], w2b_ref[...], preferred_element_type=jnp.float32)
               + b2_ref[...])
        out_ref[0] = att_ref[0] * jnp.maximum(pre, 0.0)


@functools.partial(jax.jit, static_argnames=("tm", "tk"))
def fact_gcn_forward(h, att, adj, params, tm=None, tk=None):
    """h: (B,N,D_in) f32, att: (B,N,1) f32, adj: (B,N,N) 0/1 with adj[b,dst,src]."""
    w1, b1, w2, b2 = params["w1"], params["b1"], params["w2"], params["b2"]
    B, N, d_in = h.shape
    d_out = b2.shape[0]
    d_op = _round_up(d_out, 128)           # lane-dense final store only (K stays d_in)

    # ---- hoisted node_fc + message payload (runs once, fused by XLA in this jit) ----
    h1 = jnp.einsum("bnd,ed->bne", h, w1) + b1           # apply_nodes
    z = (att * h1).astype(jnp.bfloat16)                  # per-source message (bf16 MXU feed)

    # ---- tile plan: VMEM-budget aware (per-generation capacity) ----------------------
    budget = int(_vmem_capacity_bytes() * 0.7)
    if tm is None:
        tm = 128 if N <= 128 else 256
        # keep at least 2 "parallel" programs so both v7x TensorCores get work
        while B * pl.cdiv(N, tm) < 2 and tm > 128:
            tm //= 2
    Np = _round_up(N, tm)
    if tk is None:
        cands = [t for t in range(Np, 127, -128) if Np % t == 0]
        tk = next((t for t in cands if _step_bytes(tm, t, d_in, d_op) <= budget), 128)
    assert Np % tm == 0 and Np % tk == 0, "tiles must divide the padded node count"

    # ---- padded / cast operands (all fused under this jit; padding is exact) ---------
    # Padded source nodes have z = 0 and adj = 0, padded dst rows have att = 0, and
    # padded weight columns are 0, so padded outputs are identically 0 and sliced off.
    h1_p = jnp.zeros((B, Np, d_in), jnp.float32).at[:, :N, :].set(h1)
    z_p = jnp.zeros((B, Np, d_in), jnp.bfloat16).at[:, :N, :].set(z)
    att_p = jnp.zeros((B, Np, 1), jnp.float32).at[:, :N, :].set(att)
    # NOTE: adjacency is assumed binary (0/1); int8 storage is exact in that case.
    adj_p = jnp.zeros((B, Np, Np), jnp.int8).at[:, :N, :N].set(adj.astype(jnp.int8))

    w2a_t = jnp.zeros((d_in, d_op), jnp.float32).at[:, :d_out].set(w2[:, :d_in].T)
    w2b_t = jnp.zeros((d_in, d_op), jnp.float32).at[:, :d_out].set(w2[:, d_in:].T)
    b2_r = jnp.zeros((1, d_op), jnp.float32).at[0, :d_out].set(b2)

    gi, gk = Np // tm, Np // tk

    if gk == 1:
        # Flat kernel: whole source axis in one adj row slab, no scratch accumulator.
        grid = (B, gi)
        in_specs = [
            pl.BlockSpec((1, Np, d_in), lambda b, i: (b, 0, 0)),    # z   (all sources)
            pl.BlockSpec((1, tm, d_in), lambda b, i: (b, i, 0)),    # h1  (dest tile)
            pl.BlockSpec((1, tm, 1), lambda b, i: (b, i, 0)),       # att (dest tile)
            pl.BlockSpec((1, tm, Np), lambda b, i: (b, i, 0)),      # adj row slab (int8)
            pl.BlockSpec((d_in, d_op), lambda b, i: (0, 0)),        # W2a (acts on msg)
            pl.BlockSpec((d_in, d_op), lambda b, i: (0, 0)),        # W2b (acts on h1)
            pl.BlockSpec((1, d_op), lambda b, i: (0, 0)),           # b2
        ]
        out_specs = pl.BlockSpec((1, tm, d_op), lambda b, i: (b, i, 0))
        scratch = []
        kernel = _fact_gcn_flat_kernel
        dims = ("parallel", "parallel")
    else:
        # k-tiled reduction over source tiles; msg lives in an f32 VMEM accumulator.
        grid = (B, gi, gk)
        in_specs = [
            pl.BlockSpec((1, tk, d_in), lambda b, i, k: (b, k, 0)),  # z   (source tile)
            pl.BlockSpec((1, tm, d_in), lambda b, i, k: (b, i, 0)),  # h1  (dest tile)
            pl.BlockSpec((1, tm, 1), lambda b, i, k: (b, i, 0)),     # att (dest tile)
            pl.BlockSpec((1, tm, tk), lambda b, i, k: (b, i, k)),    # adj tile (int8)
            pl.BlockSpec((d_in, d_op), lambda b, i, k: (0, 0)),      # W2a
            pl.BlockSpec((d_in, d_op), lambda b, i, k: (0, 0)),      # W2b
            pl.BlockSpec((1, d_op), lambda b, i, k: (0, 0)),         # b2
        ]
        out_specs = pl.BlockSpec((1, tm, d_op), lambda b, i, k: (b, i, 0))
        scratch = [pltpu.VMEM((tm, d_in), jnp.float32)]
        kernel = _fact_gcn_reduce_kernel
        dims = ("parallel", "parallel", "arbitrary")

    vmem_limit = int(min(budget, max(2 * _step_bytes(tm, tk, d_in, d_op), 32 << 20)))

    # Advisory cost hint (pallas_call only; the hoisted node_fc is XLA's to schedule).
    flops = 2 * B * Np * Np * d_in + 4 * B * Np * d_in * d_op
    bytes_accessed = (adj_p.size * 1 + z_p.size * 2 + h1_p.size * 4 + att_p.size * 4
                      + B * Np * d_op * 4
                      + (w2a_t.size + w2b_t.size + b2_r.size) * 4)

    out_p = pl.pallas_call(
        kernel,
        out_shape=jax.ShapeDtypeStruct((B, Np, d_op), jnp.float32),
        grid_spec=pltpu.PrefetchScalarGridSpec(
            num_scalar_prefetch=0,
            grid=grid,
            in_specs=in_specs,
            out_specs=out_specs,
            scratch_shapes=scratch),
        compiler_params=pltpu.CompilerParams(
            dimension_semantics=dims,
            vmem_limit_bytes=vmem_limit),
        cost_estimate=pl.CostEstimate(flops=int(flops), transcendentals=0,
                                      bytes_accessed=int(bytes_accessed)),
    )(z_p, h1_p, att_p, adj_p, w2a_t, w2b_t, b2_r)

    return out_p[:, :N, :d_out]


def _reference(h, att, adj, params):
    """Pure-JAX reference of the dense FactGCN layer (batched)."""
    w1, b1, w2, b2 = params["w1"], params["b1"], params["w2"], params["b2"]
    h1 = jnp.einsum("bnd,ed->bne", h, w1) + b1
    msg = jnp.einsum("bds,bse->bde", adj, att * h1)
    cat = jnp.concatenate([msg, h1], axis=-1)
    pre = jnp.einsum("bnk,ok->bno", cat, w2) + b2
    return att * jax.nn.relu(pre)


def init_params(key, in_dim, out_dim):
    """Deterministic PyTorch-Linear-style init (uniform +-1/sqrt(fan_in))."""
    k1, k2, k3, k4 = jax.random.split(key, 4)
    bound1 = 1.0 / jnp.sqrt(in_dim)
    bound2 = 1.0 / jnp.sqrt(2 * in_dim)
    return {
        "w1": jax.random.uniform(k1, (in_dim, in_dim), jnp.float32, -bound1, bound1),
        "b1": jax.random.uniform(k2, (in_dim,), jnp.float32, -bound1, bound1),
        "w2": jax.random.uniform(k3, (out_dim, 2 * in_dim), jnp.float32, -bound2, bound2),
        "b2": jax.random.uniform(k4, (out_dim,), jnp.float32, -bound2, bound2),
    }


if __name__ == "__main__":
    key = jax.random.PRNGKey(0)
    k_h, k_att, k_adj, k_p = jax.random.split(key, 4)

    # Batch of small dense fact graphs; feature dims match the mucko layer config.
    B, N, IN_DIM, OUT_DIM = 4, 256, 32, 32

    h = jax.random.normal(k_h, (B, N, IN_DIM), jnp.float32)
    att = jax.nn.softmax(jax.random.normal(k_att, (B, N, 1), jnp.float32), axis=1)

    # Random directed adjacency adj[b, dst, src]; self-loops keep in-degree >= 1.
    adj = (jax.random.uniform(k_adj, (B, N, N)) < 0.15).astype(jnp.float32)
    adj = jnp.maximum(adj, jnp.eye(N, dtype=jnp.float32)[None])

    params = init_params(k_p, IN_DIM, OUT_DIM)
    ref = _reference(h, att, adj, params)

    # Default plan: full source row slab, no reduction axis (flat kernel).
    out = jax.block_until_ready(fact_gcn_forward(h, att, adj, params))
    assert out.shape == (B, N, OUT_DIM)
    # Tolerance reflects the bf16 message payload (accumulation stays f32).
    assert jnp.allclose(out, ref, atol=2e-4, rtol=2e-3), "flat kernel mismatch"

    # Forced small tiles: exercises the k-tiled accumulator kernel path as well.
    out2 = jax.block_until_ready(fact_gcn_forward(h, att, adj, params, tm=128, tk=128))
    assert jnp.allclose(out2, ref, atol=2e-4, rtol=2e-3), "reduce kernel mismatch"

    print("KERNEL_OK")
</pallas_src>

<mosaic_0001>
module attributes {stable_mosaic.version = 11 : i64} {
  func.func @_fact_gcn_flat_kernel(%arg0: i32, %arg1: i32, %arg2: memref<1x256x32xbf16, #tpu.memory_space<vmem>>, %arg3: memref<1x256x32xf32, #tpu.memory_space<vmem>>, %arg4: memref<1x256x1xf32, #tpu.memory_space<vmem>>, %arg5: memref<1x256x256xi8, #tpu.memory_space<vmem>>, %arg6: memref<32x128xf32, #tpu.memory_space<vmem>>, %arg7: memref<32x128xf32, #tpu.memory_space<vmem>>, %arg8: memref<1x128xf32, #tpu.memory_space<vmem>>, %arg9: memref<1x256x128xf32, #tpu.memory_space<vmem>>) attributes {dimension_semantics = [#tpu.dimension_semantics<parallel>, #tpu.dimension_semantics<parallel>], iteration_bounds = array<i64: 4, 1>, scalar_prefetch = 0 : i64, scratch_operands = 0 : i64, tpu.core_type = #tpu.core_type<tc>, window_params = [{transform_indices = @transform_0, window_bounds = array<i64: 1, 256, 32>}, {transform_indices = @transform_1, window_bounds = array<i64: 1, 256, 32>}, {transform_indices = @transform_2, window_bounds = array<i64: 1, 256, 1>}, {transform_indices = @transform_3, window_bounds = array<i64: 1, 256, 256>}, {pipeline_mode = #tpu.pipeline_mode<synchronous>, transform_indices = @transform_4, window_bounds = array<i64: 32, 128>}, {pipeline_mode = #tpu.pipeline_mode<synchronous>, transform_indices = @transform_5, window_bounds = array<i64: 32, 128>}, {pipeline_mode = #tpu.pipeline_mode<synchronous>, transform_indices = @transform_6, window_bounds = array<i64: 1, 128>}, {transform_indices = @transform_7, window_bounds = array<i64: 1, 256, 128>}]} {
    %c0 = arith.constant 0 : index
    %c0_0 = arith.constant 0 : index
    %c0_1 = arith.constant 0 : index
    %0 = vector.load %arg5[%c0, %c0_0, %c0_1] : memref<1x256x256xi8, #tpu.memory_space<vmem>>, vector<1x256x256xi8>
    %1 = vector.shape_cast %0 : vector<1x256x256xi8> to vector<256x256xi8>
    %2 = arith.sitofp %1 : vector<256x256xi8> to vector<256x256xbf16>
    %c0_2 = arith.constant 0 : index
    %c0_3 = arith.constant 0 : index
    %c0_4 = arith.constant 0 : index
    %3 = vector.load %arg2[%c0_2, %c0_3, %c0_4] : memref<1x256x32xbf16, #tpu.memory_space<vmem>>, vector<1x256x32xbf16>
    %4 = vector.shape_cast %3 : vector<1x256x32xbf16> to vector<256x32xbf16>
    %cst = arith.constant dense<0.000000e+00> : vector<256x32xf32>
    %5 = tpu.matmul %2, %4, %cst {dimension_numbers = #tpu.dot_dimension_numbers<[1], [0], [0], [1], [0, 0, 1, 1], [], []>} : vector<256x256xbf16>, vector<256x32xbf16>, vector<256x32xf32> -> vector<256x32xf32>
    %c0_5 = arith.constant 0 : index
    %c0_6 = arith.constant 0 : index
    %6 = vector.load %arg6[%c0_5, %c0_6] : memref<32x128xf32, #tpu.memory_space<vmem>>, vector<32x128xf32>
    %cst_7 = arith.constant dense<0.000000e+00> : vector<256x128xf32>
    %7 = tpu.matmul %5, %6, %cst_7 {dimension_numbers = #tpu.dot_dimension_numbers<[1], [0], [0], [1], [0, 0, 1, 1], [], []>} : vector<256x32xf32>, vector<32x128xf32>, vector<256x128xf32> -> vector<256x128xf32>
    %c0_8 = arith.constant 0 : index
    %c0_9 = arith.constant 0 : index
    %c0_10 = arith.constant 0 : index
    %8 = vector.load %arg3[%c0_8, %c0_9, %c0_10] : memref<1x256x32xf32, #tpu.memory_space<vmem>>, vector<1x256x32xf32>
    %9 = vector.shape_cast %8 : vector<1x256x32xf32> to vector<256x32xf32>
    %c0_11 = arith.constant 0 : index
    %c0_12 = arith.constant 0 : index
    %10 = vector.load %arg7[%c0_11, %c0_12] : memref<32x128xf32, #tpu.memory_space<vmem>>, vector<32x128xf32>
    %cst_13 = arith.constant dense<0.000000e+00> : vector<256x128xf32>
    %11 = tpu.matmul %9, %10, %cst_13 {dimension_numbers = #tpu.dot_dimension_numbers<[1], [0], [0], [1], [0, 0, 1, 1], [], []>} : vector<256x32xf32>, vector<32x128xf32>, vector<256x128xf32> -> vector<256x128xf32>
    %12 = arith.addf %7, %11 : vector<256x128xf32>
    %c0_14 = arith.constant 0 : index
    %c0_15 = arith.constant 0 : index
    %13 = vector.load %arg8[%c0_14, %c0_15] : memref<1x128xf32, #tpu.memory_space<vmem>>, vector<1x128xf32>
    %14 = vector.broadcast %13 : vector<1x128xf32> to vector<256x128xf32>
    %15 = arith.addf %12, %14 : vector<256x128xf32>
    %c0_16 = arith.constant 0 : index
    %c0_17 = arith.constant 0 : index
    %c0_18 = arith.constant 0 : index
    %16 = vector.load %arg4[%c0_16, %c0_17, %c0_18] : memref<1x256x1xf32, #tpu.memory_space<vmem>>, vector<1x256x1xf32>
    %17 = vector.shape_cast %16 : vector<1x256x1xf32> to vector<256x1xf32>
    %cst_19 = arith.constant 0.000000e+00 : f32
    %18 = vector.broadcast %cst_19 : f32 to vector<256x128xf32>
    %19 = arith.maximumf %15, %18 : vector<256x128xf32>
    %20 = vector.broadcast %17 : vector<256x1xf32> to vector<256x128xf32>
    %21 = arith.mulf %20, %19 : vector<256x128xf32>
    %c0_20 = arith.constant 0 : index
    %c0_21 = arith.constant 0 : index
    %c0_22 = arith.constant 0 : index
    %22 = vector.load %arg9[%c0_20, %c0_21, %c0_22] : memref<1x256x128xf32, #tpu.memory_space<vmem>>, vector<1x256x128xf32>
    %23 = vector.shape_cast %22 : vector<1x256x128xf32> to vector<256x128xf32>
    %24 = vector.shape_cast %21 : vector<256x128xf32> to vector<1x256x128xf32>
    tpu.vector_store %arg9[%c0_20, %c0_21, %c0_22], %24 {strides = array<i32>} : memref<1x256x128xf32, #tpu.memory_space<vmem>>, vector<1x256x128xf32>,
    return
  }
  func.func @transform_0(%arg0: i32, %arg1: i32) -> (i32, i32, i32) {
    %c0_i32 = arith.constant 0 : i32
    %c0_i32_0 = arith.constant 0 : i32
    %c0_i32_1 = arith.constant 0 : i32
    return %arg0, %c0_i32, %c0_i32_0 : i32, i32, i32
  }
  func.func @transform_1(%arg0: i32, %arg1: i32) -> (i32, i32, i32) {
    %c0_i32 = arith.constant 0 : i32
    %c0_i32_0 = arith.constant 0 : i32
    return %arg0, %arg1, %c0_i32 : i32, i32, i32
  }
  func.func @transform_2(%arg0: i32, %arg1: i32) -> (i32, i32, i32) {
    %c0_i32 = arith.constant 0 : i32
    %c0_i32_0 = arith.constant 0 : i32
    return %arg0, %arg1, %c0_i32 : i32, i32, i32
  }
  func.func @transform_3(%arg0: i32, %arg1: i32) -> (i32, i32, i32) {
    %c0_i32 = arith.constant 0 : i32
    %c0_i32_0 = arith.constant 0 : i32
    return %arg0, %arg1, %c0_i32 : i32, i32, i32
  }
  func.func @transform_4(%arg0: i32, %arg1: i32) -> (i32, i32) {
    %c0_i32 = arith.constant 0 : i32
    %c0_i32_0 = arith.constant 0 : i32
    %c0_i32_1 = arith.constant 0 : i32
    return %c0_i32, %c0_i32_0 : i32, i32
  }
  func.func @transform_5(%arg0: i32, %arg1: i32) -> (i32, i32) {
    %c0_i32 = arith.constant 0 : i32
    %c0_i32_0 = arith.constant 0 : i32
    %c0_i32_1 = arith.constant 0 : i32
    return %c0_i32, %c0_i32_0 : i32, i32
  }
  func.func @transform_6(%arg0: i32, %arg1: i32) -> (i32, i32) {
    %c0_i32 = arith.constant 0 : i32
    %c0_i32_0 = arith.constant 0 : i32
    %c0_i32_1 = arith.constant 0 : i32
    return %c0_i32, %c0_i32_0 : i32, i32
  }
  func.func @transform_7(%arg0: i32, %arg1: i32) -> (i32, i32, i32) {
    %c0_i32 = arith.constant 0 : i32
    %c0_i32_0 = arith.constant 0 : i32
    return %arg0, %arg1, %c0_i32 : i32, i32, i32
  }
}

</mosaic_0001>

<bundles_post_ra>
// kernel: fact_gcn_forward.1
= control target key start
LH: loop header
LB: loop body
LE: loop exit
PB: predicated region body
PF: predicated region fallthrough
CT: control target
= control target key end

     0   :  { %s2406_s24 = smov 0   ;;  %s2408_s25 = smov 0   ;;  %s2816_s0 = inlined_call_operand.vmem [shape: bf16[4,256,32], index: 0, kind: input, shape index: {}]   ;;  %s2817_s1 = inlined_call_operand.vmem [shape: f32[4,256,32], index: 1, kind: input, shape index: {}]   ;;  %s2818_s2 = inlined_call_operand.vmem [shape: f32[4,256,1], index: 2, kind: input, shape index: {}]   ;;  %s2819_s3 = inlined_call_operand.vmem [shape: s8[4,256,256], index: 3, kind: input, shape index: {}]   ;;  %s2820_s4 = inlined_call_operand.vmem [shape: f32[32,128], index: 4, kind: input, shape index: {}]   ;;  %s2821_s5 = inlined_call_operand.vmem [shape: f32[32,128], index: 5, kind: input, shape index: {}]   ;;  %s2822_s6 = inlined_call_operand.vmem [shape: f32[1,128], index: 6, kind: input, shape index: {}]   ;;  %s2823_s7 = inlined_call_operand.vmem [shape: f32[4,256,128], index: 7, kind: output, shape index: {}]  }
   0x1   :  { %s2410_s26 = smov 0  }
   0x2 LB: > { %s29_s27 = sadd.s32 1, %s2359_s25  ;;  %p1903_p0 = scmp.ge.s32.totalorder %s2363_s26, 1  ;;  %s2363_s26 = sphi %s2410_s26, %s17_s26   ;;  %s2359_s25 = sphi %s2408_s25, %s2825_s25   ;;  %s2355_s24 = sphi %s2406_s24, %s2824_s24  }
   0x3   : > { %p31_p1 = scmp.ge.s32.totalorder %s29_s27, 4  ;;  %p303_p2 = scmp.lt.s32.totalorder %s2363_s26, 5 }
   0x5   : > { %s2827_s27 = smov (%p31_p1, %s29_s27), 0  ;;  %p304_p3 = pnand %p1903_p0, %p303_p2 }
   0x6   : > { %p367_p4 = scmp.lt.s32.totalorder (!%p304_p3), %s2355_s24, 3 }
   0x7   : > { %307 = sbr.rel (%p304_p3) target bundleno = 573 (0x23d), region = 48 }
   0xc   : > { %s2829_s24 = smov (!%p367_p4, %s2355_s24), 3  ;;  %v790_v17 = vld [vmem:[%s2821_s5 + $0x18] sm:$0xff]  ;;  %v789_v18 = vld [vmem:[%s2821_s5 + $0x10] sm:$0xff]  ;;  %vm791_vm0 = vcmask 261120   ;;  %v788_v21 = vld [vmem:[%s2821_s5 + $0x8] sm:$0xff] }
   0xd   : > { %s1997_s28 = sshll.u32 %s2829_s24, 7  ;;  %s2460_s16 = sshll.u32 %s2829_s24, 8  ;;  %2186 = vmatprep.subr.mxu1 %v790_v17  ;;  %v787_v24 = vld [vmem:[%s2821_s5] sm:$0xff] }
   0xe   : > { %s2430_s8 = scalar_lea.vmem %s2816_s0, %s1997_s28  ;;  %s2444_s11 = scalar_lea.vmem %s2819_s3, %s1997_s28  ;;  %2187 = vmatpush3.msra.mxu1 %v790_v17 }
   0xf   : > { %v2325_v0 = vld [vmem:[%s2430_s8 + $0x78] sm:$0xff]   ;;  %v2327_v2 = vld [vmem:[%s2430_s8 + $0x70] sm:$0xff]   ;;  %v2329_v4 = vld [vmem:[%s2430_s8 + $0x68] sm:$0xff]   ;;  %s2468_s19 = scalar_lea.vmem %s2817_s1, %s2460_s16  ;;  %2188 = vmatprep.subr.mxu1 %v789_v18  ;;  %s2570_s15 = scalar_lea.vmem %s2818_s2, %s2460_s16 }
  0x10   : > { %v2326_v1 = vld [vmem:[%s2430_s8 + $0x38] sm:$0xff]   ;;  %2002 = vmatprep.subr.bf16.mxu0 %v2325_v0  ;;  %v2328_v3 = vld [vmem:[%s2430_s8 + $0x30] sm:$0xff]   ;;  %v2330_v5 = vld [vmem:[%s2430_s8 + $0x28] sm:$0xff]   ;;  %2189 = vmatpush3.msra.mxu1 %v789_v18  ;;  %s2713_s20 = scalar_lea.vmem %s2823_s7, %s2460_s16 }
  0x11   : > { %2003 = vmatpush3.bf16.msra.mxu0 %v2326_v1  ;;  %v2331_v6 = vld [vmem:[%s2430_s8 + $0x60] sm:$0xff]   ;;  %v2333_v8 = vld [vmem:[%s2430_s8 + $0x58] sm:$0xff]   ;;  %v2335_v10 = vld [vmem:[%s2430_s8 + $0x50] sm:$0xff]   ;;  %2190 = vmatprep.subr.mxu1 %v788_v21 }
  0x12   : > { %2004 = vmatprep.subr.bf16.mxu0 %v2327_v2  ;;  %v2332_v7 = vld [vmem:[%s2430_s8 + $0x20] sm:$0xff]   ;;  %v2334_v9 = vld [vmem:[%s2430_s8 + $0x18] sm:$0xff]   ;;  %v415_v11 = vld [vmem:[%s2444_s11 + $0x8] sm:$0xff]  ;;  %2191 = vmatpush3.msra.mxu1 %v788_v21 }
  0x13   : > { %v431_v12 = vunpack.c.l.s8.bf16 %v415_v11  ;;  %v2336_v13 = vld [vmem:[%s2430_s8 + $0x10] sm:$0xff]   ;;  %v2337_v14 = vld [vmem:[%s2430_s8 + $0x48] sm:$0xff]   ;;  %v2339_v16 = vld [vmem:[%s2430_s8 + $0x40] sm:$0xff]   ;;  %v433_v25 = vunpack.c.h.s8.bf16 %v415_v11  ;;  %2192 = vmatprep.subr.mxu1 %v787_v24 }
  0x14   : > { %v2338_v15 = vld [vmem:[%s2430_s8 + $0x8] sm:$0xff]   ;;  %v2340_v19 = vld [vmem:[%s2430_s8] sm:$0xff]   ;;  %v757_v27 = vld [vmem:[%s2468_s19 + $0x10] sm:$0xff]  ;;  %2193 = vmatpush3.msra.mxu1 %v787_v24 }
  0x15   : > { %2005 = vmatpush3.bf16.msra.mxu0 %v2328_v3  ;;  %622 = vmatprep.mubr.bf16.mxu0 %v431_v12  ;;  %v414_v20 = vld [vmem:[%s2444_s11] sm:$0xff]  ;;  %v756_v26 = vld [vmem:[%s2468_s19 + $0x8] sm:$0xff]  ;;  %v417_v28 = vld [vmem:[%s2444_s11 + $0x18] sm:$0xff] }
  0x16   : > { %2006 = vmatprep.subr.bf16.mxu0 %v2329_v4  ;;  %v755_v22 = vld [vmem:[%s2468_s19] sm:$0xff]  ;;  %v430_v23 = vunpack.c.l.s8.bf16 %v414_v20  ;;  %v758_v29 = vld [vmem:[%s2468_s19 + $0x18] sm:$0xff]  ;;  %v432_v31 = vunpack.c.h.s8.bf16 %v414_v20  ;;  %v435_v32 = vunpack.c.l.s8.bf16 %v417_v28  ;;  %v760_v33 = vld [vmem:[%s2468_s19 + $0x28] sm:$0xff]  ;;  %v437_v39 = vunpack.c.h.s8.bf16 %v417_v28 }
  0x17   : > { %2194 = vmatprep.mubr.msk.f32.mxu1 %vm791_vm0, %v755_v22  ;;  %v759_v30 = vld [vmem:[%s2468_s19 + $0x20] sm:$0xff]  ;;  %v761_v34 = vld [vmem:[%s2468_s19 + $0x30] sm:$0xff]  ;;  %v762_v36 = vld [vmem:[%s2468_s19 + $0x38] sm:$0xff] }
  0x18   : > { %2195 = vmatmul.mubr.msk.f32.vlgmr.msra.gmra.mxu1 %vm791_vm0, %v756_v26  ;;  %v416_v35 = vld [vmem:[%s2444_s11 + $0x10] sm:$0xff]  ;;  %v763_v37 = vld [vmem:[%s2468_s19 + $0x40] sm:$0xff]  ;;  %v764_v40 = vld [vmem:[%s2468_s19 + $0x48] sm:$0xff] }
  0x19   : > { %2007 = vmatpush3.bf16.msra.mxu0 %v2330_v5  ;;  %2197 = vmatprep.mubr.msk.f32.mxu1 %vm791_vm0, %v757_v27  ;;  %v434_v38 = vunpack.c.l.s8.bf16 %v416_v35  ;;  %v765_v41 = vld [vmem:[%s2468_s19 + $0x50] sm:$0xff]  ;;  %v419_v42 = vld [vmem:[%s2444_s11 + $0x28] sm:$0xff]  ;;  %v766_v43 = vld [vmem:[%s2468_s19 + $0x58] sm:$0xff]  ;;  %v436_v45 = vunpack.c.h.s8.bf16 %v416_v35 }
  0x1a   : > { %2008 = vmatprep.subr.bf16.mxu0 %v2331_v6  ;;  %v767_v44 = vld [vmem:[%s2468_s19 + $0x60] sm:$0xff]  ;;  %v439_v46 = vunpack.c.l.s8.bf16 %v419_v42  ;;  %v768_v47 = vld [vmem:[%s2468_s19 + $0x68] sm:$0xff]  ;;  %v769_v48 = vld [vmem:[%s2468_s19 + $0x70] sm:$0xff]  ;;  %v441_v53 = vunpack.c.h.s8.bf16 %v419_v42 }
  0x1b   : > { %v418_v49 = vld [vmem:[%s2444_s11 + $0x20] sm:$0xff]  ;;  %v770_v50 = vld [vmem:[%s2468_s19 + $0x78] sm:$0xff]  ;;  %v772_v54 = vld [vmem:[%s2468_s19 + $0x88] sm:$0xff] }
  0x1c   : > { %2198 = vmatmul.mubr.msk.f32.gmra.mxu1 %vm791_vm0, %v758_v29  ;;  %v771_v51 = vld [vmem:[%s2468_s19 + $0x80] sm:$0xff]  ;;  %v438_v52 = vunpack.c.l.s8.bf16 %v418_v49  ;;  %v773_v55 = vld [vmem:[%s2468_s19 + $0x90] sm:$0xff]  ;;  %v421_v56 = vld [vmem:[%s2444_s11 + $0x38] sm:$0xff]  ;;  %v440_v59 = vunpack.c.h.s8.bf16 %v418_v49 }
  0x1d   : > { %2009 = vmatpush3.bf16.msra.mxu0 %v2332_v7  ;;  %2200 = vmatprep.mubr.msk.f32.mxu1 %vm791_vm0, %v759_v30  ;;  %v774_v57 = vld [vmem:[%s2468_s19 + $0x98] sm:$0xff]  ;;  %v775_v58 = vld [vmem:[%s2468_s19 + $0xa0] sm:$0xff]  ;;  %v443_v60 = vunpack.c.l.s8.bf16 %v421_v56  ;;  %v776_v61 = vld [vmem:[%s2468_s19 + $0xa8] sm:$0xff]  ;;  %v445_v3 = vunpack.c.h.s8.bf16 %v421_v56 }
  0x1e   : > { %2010 = vmatprep.subr.bf16.mxu0 %v2333_v8  ;;  %v777_v62 = vld [vmem:[%s2468_s19 + $0xb0] sm:$0xff]  ;;  %v778_v0 = vld [vmem:[%s2468_s19 + $0xb8] sm:$0xff]  ;;  %v779_v1 = vld [vmem:[%s2468_s19 + $0xc0] sm:$0xff] }
  0x1f   : > { %v420_v63 = vld [vmem:[%s2444_s11 + $0x30] sm:$0xff]  ;;  %v780_v4 = vld [vmem:[%s2468_s19 + $0xc8] sm:$0xff]  ;;  %v782_v7 = vld [vmem:[%s2468_s19 + $0xd8] sm:$0xff] }
  0x20   : > { %2201 = vmatmul.mubr.msk.f32.gmra.mxu1 %vm791_vm0, %v760_v33  ;;  %v442_v2 = vunpack.c.l.s8.bf16 %v420_v63  ;;  %v781_v5 = vld [vmem:[%s2468_s19 + $0xd0] sm:$0xff]  ;;  %v423_v6 = vld [vmem:[%s2444_s11 + $0x48] sm:$0xff]  ;;  %v783_v8 = vld [vmem:[%s2468_s19 + $0xe0] sm:$0xff] }
  0x21   : > { %2011 = vmatpush3.bf16.msra.mxu0 %v2334_v9  ;;  %2203 = vmatprep.mubr.msk.f32.mxu1 %vm791_vm0, %v761_v34  ;;  %v444_v9 = vunpack.c.h.s8.bf16 %v420_v63  ;;  %v422_v11 = vld [vmem:[%s2444_s11 + $0x40] sm:$0xff]  ;;  %v785_v17 = vld [vmem:[%s2468_s19 + $0xf0] sm:$0xff]  ;;  %v752_v21 = vld [vmem:[%s2820_s4 + $0x8] sm:$0xff] }
  0x22   : > { %2012 = vmatprep.subr.bf16.mxu0 %v2335_v10  ;;  %v447_v10 = vunpack.c.l.s8.bf16 %v423_v6  ;;  %v446_v12 = vunpack.c.l.s8.bf16 %v422_v11  ;;  %v753_v18 = vld [vmem:[%s2820_s4 + $0x10] sm:$0xff]  ;;  %v448_v20 = vunpack.c.h.s8.bf16 %v422_v11  ;;  %v427_v27 = vld [vmem:[%s2444_s11 + $0x68] sm:$0xff]  ;;  %v426_v30 = vld [vmem:[%s2444_s11 + $0x60] sm:$0xff] }
  0x23   : > { %v424_v24 = vld [vmem:[%s2444_s11 + $0x50] sm:$0xff]  ;;  %v455_v29 = vunpack.c.l.s8.bf16 %v427_v27  ;;  %v429_v33 = vld [vmem:[%s2444_s11 + $0x78] sm:$0xff]  ;;  %v456_v34 = vunpack.c.h.s8.bf16 %v426_v30  ;;  %v1474_v42 = vld [vmem:[%s2570_s15 + $0x8] sm:$0xff] }
  0x24   : > { %2204 = vmatmul.mubr.msk.f32.gmra.mxu1 %vm791_vm0, %v762_v36  ;;  %v452_v28 = vunpack.c.h.s8.bf16 %v424_v24  ;;  %v459_v35 = vunpack.c.l.s8.bf16 %v429_v33  ;;  %v428_v36 = vld [vmem:[%s2444_s11 + $0x70] sm:$0xff]  ;;  %v1482_v49 = vld [vmem:[%s2570_s15 + $0x48] sm:$0xff] }
  0x25   : > { %2013 = vmatpush3.bf16.msra.mxu0 %v2336_v13  ;;  %2206 = vmatprep.mubr.msk.f32.mxu1 %vm791_vm0, %v763_v37  ;;  %v449_v13 = vunpack.c.h.s8.bf16 %v423_v6  ;;  %v458_v37 = vunpack.c.l.s8.bf16 %v428_v36  ;;  %v1487_v56 = vld [vmem:[%s2570_s15 + $0x70] sm:$0xff] }
  0x26   : > { %2014 = vmatprep.subr.bf16.mxu0 %v2337_v14  ;;  %v784_v14 = vld [vmem:[%s2468_s19 + $0xe8] sm:$0xff] }
  0x28   : > { %2207 = vmatmul.mubr.msk.f32.gmra.mxu1 %vm791_vm0, %v764_v40  ;;  %v2365_v40 = vmov 0  }
  0x29   : > { %2015 = vmatpush3.bf16.msra.mxu0 %v2338_v15  ;;  %2209 = vmatprep.mubr.msk.f32.mxu1 %vm791_vm0, %v765_v41  ;;  %v754_v15 = vld [vmem:[%s2820_s4 + $0x18] sm:$0xff]  ;;  %v1473_v41 = vld [vmem:[%s2570_s15] sm:$0xff] }
  0x2a   : > { %2016 = vmatprep.subr.bf16.mxu0 %v2339_v16  ;;  %2242 = vmatprep.subr.mxu1 %v754_v15  ;;  %v425_v16 = vld [vmem:[%s2444_s11 + $0x58] sm:$0xff] }
  0x2b   : > { %2243 = vmatpush3.msra.mxu1 %v754_v15  ;;  %v451_v22 = vunpack.c.l.s8.bf16 %v425_v16  ;;  %v453_v26 = vunpack.c.h.s8.bf16 %v425_v16  ;;  %2323 = vset.pattern.permute.xlu0 %v2365_v40  ;;  %v1501_v15 = vld [vmem:[%s2570_s15 + $0xe0] sm:$0xff] }
  0x2c   : > { %2210 = vmatmul.mubr.msk.f32.gmra.mxu1 %vm791_vm0, %v766_v43  ;;  %2244 = vmatprep.subr.mxu1 %v753_v18  ;;  %v1475_v43 = vld [vmem:[%s2570_s15 + $0x10] sm:$0xff] }
  0x2d   : > { %2017 = vmatpush3.bf16.msra.mxu0 %v2340_v19  ;;  %2212 = vmatprep.mubr.msk.f32.mxu1 %vm791_vm0, %v767_v44  ;;  %v786_v19 = vld [vmem:[%s2468_s19 + $0xf8] sm:$0xff] }
  0x2e   : > { %2245 = vmatpush3.msra.mxu1 %v753_v18  ;;  %2324 = vset.pattern.permute.xlu1 %v2365_v40  ;;  %v1476_v44 = vld [vmem:[%s2570_s15 + $0x18] sm:$0xff] }
  0x2f   : > { %2246 = vmatprep.subr.mxu1 %v752_v21  ;;  %1539 = vperm.xlu0 %2323, %v1473_v41  }
  0x30   : > { %623 = vmatmul.mubr.bf16.vlgmr.msra.gmra.mxu0 %v430_v23  ;;  %2213 = vmatmul.mubr.msk.f32.gmra.mxu1 %vm791_vm0, %v768_v47  ;;  %v751_v23 = vld [vmem:[%s2820_s4] sm:$0xff]  ;;  %v1480_v47 = vld [vmem:[%s2570_s15 + $0x38] sm:$0xff] }
  0x31   : > { %630 = vmatprep.mubr.bf16.mxu0 %v433_v25  ;;  %2215 = vmatprep.mubr.msk.f32.mxu1 %vm791_vm0, %v769_v48  ;;  %v450_v25 = vunpack.c.l.s8.bf16 %v424_v24  ;;  %v1479_v48 = vld [vmem:[%s2570_s15 + $0x30] sm:$0xff] }
  0x32   : > { %2247 = vmatpush3.msra.mxu1 %v752_v21  ;;  %1549 = vperm.xlu1 %2324, %v1475_v43  }
  0x33   : > { %2248 = vmatprep.subr.mxu1 %v751_v23  ;;  %1544 = vperm.xlu0 %2323, %v1474_v42  }
  0x34   : > { %2216 = vmatmul.mubr.msk.f32.gmra.mxu1 %vm791_vm0, %v770_v50  ;;  %v1481_v50 = vld [vmem:[%s2570_s15 + $0x40] sm:$0xff] }
  0x35   : > { %2218 = vmatprep.mubr.msk.f32.mxu1 %vm791_vm0, %v771_v51  ;;  %2249 = vmatpush3.msra.mxu1 %v751_v23  ;;  %v1484_v51 = vld [vmem:[%s2570_s15 + $0x58] sm:$0xff] }
  0x36   : > { %1554 = vperm.xlu1 %2324, %v1476_v44  }
  0x38   : > { %631 = vmatmul.mubr.bf16.gmra.mxu0 %v432_v31  ;;  %2219 = vmatmul.mubr.msk.f32.gmra.mxu1 %vm791_vm0, %v772_v54  ;;  %v454_v31 = vunpack.c.l.s8.bf16 %v426_v30  ;;  %v1485_v54 = vld [vmem:[%s2570_s15 + $0x60] sm:$0xff] }
  0x39   : > { %638 = vmatprep.mubr.bf16.mxu0 %v435_v32  ;;  %2221 = vmatprep.mubr.msk.f32.mxu1 %vm791_vm0, %v773_v55  ;;  %v457_v32 = vunpack.c.h.s8.bf16 %v427_v27  ;;  %v1488_v55 = vld [vmem:[%s2570_s15 + $0x78] sm:$0xff] }
  0x3c   : > { %2222 = vmatmul.mubr.msk.f32.gmra.mxu1 %vm791_vm0, %v774_v57  ;;  %v1490_v57 = vld [vmem:[%s2570_s15 + $0x88] sm:$0xff] }
  0x3d   : > { %2224 = vmatprep.mubr.msk.f32.mxu1 %vm791_vm0, %v775_v58  ;;  %v1489_v58 = vld [vmem:[%s2570_s15 + $0x80] sm:$0xff] }
  0x40   : > { %639 = vmatmul.mubr.bf16.gmra.mxu0 %v434_v38  ;;  %2225 = vmatmul.mubr.msk.f32.gmra.mxu1 %vm791_vm0, %v776_v61  ;;  %v461_v38 = vunpack.c.h.s8.bf16 %v429_v33  ;;  %v1494_v61 = vld [vmem:[%s2570_s15 + $0xa8] sm:$0xff] }
  0x41   : > { %646 = vmatprep.mubr.bf16.mxu0 %v437_v39  ;;  %2227 = vmatprep.mubr.msk.f32.mxu1 %vm791_vm0, %v777_v62  ;;  %v460_v39 = vunpack.c.h.s8.bf16 %v428_v36  ;;  %v1493_v62 = vld [vmem:[%s2570_s15 + $0xa0] sm:$0xff] }
  0x44   : > { %2228 = vmatmul.mubr.msk.f32.gmra.mxu1 %vm791_vm0, %v778_v0  ;;  %v1496_v0 = vld [vmem:[%s2570_s15 + $0xb8] sm:$0xff] }
  0x45   : > { %2230 = vmatprep.mubr.msk.f32.mxu1 %vm791_vm0, %v779_v1  ;;  %v1495_v1 = vld [vmem:[%s2570_s15 + $0xb0] sm:$0xff] }
  0x48   : > { %647 = vmatmul.mubr.bf16.gmra.mxu0 %v436_v45  ;;  %2231 = vmatmul.mubr.msk.f32.gmra.mxu1 %vm791_vm0, %v780_v4  ;;  %v1478_v45 = vld [vmem:[%s2570_s15 + $0x28] sm:$0xff] }
  0x49   : > { %654 = vmatprep.mubr.bf16.mxu0 %v439_v46  ;;  %2233 = vmatprep.mubr.msk.f32.mxu1 %vm791_vm0, %v781_v5  ;;  %v1477_v46 = vld [vmem:[%s2570_s15 + $0x20] sm:$0xff]  ;;  %v1498_v4 = vld [vmem:[%s2570_s15 + $0xc8] sm:$0xff] }
  0x4a   : > { %1564 = vperm.xlu1 %2324, %v1478_v45   ;;  %1559 = vperm.xlu0 %2323, %v1477_v46   ;;  %v1497_v5 = vld [vmem:[%s2570_s15 + $0xc0] sm:$0xff] }
  0x4c   : > { %2234 = vmatmul.mubr.msk.f32.gmra.mxu1 %vm791_vm0, %v782_v7 }
  0x4d   : > { %2236 = vmatprep.mubr.msk.f32.mxu1 %vm791_vm0, %v783_v8 }
  0x4e   : > { %1574 = vperm.xlu1 %2324, %v1480_v47   ;;  %1569 = vperm.xlu0 %2323, %v1479_v48  }
  0x50   : > { %655 = vmatmul.mubr.bf16.gmra.mxu0 %v438_v52  ;;  %2237 = vmatmul.mubr.msk.f32.gmra.mxu1 %vm791_vm0, %v784_v14  ;;  %v1483_v52 = vld [vmem:[%s2570_s15 + $0x50] sm:$0xff]  ;;  %v1502_v14 = vld [vmem:[%s2570_s15 + $0xe8] sm:$0xff] }
  0x51   : > { %662 = vmatprep.mubr.bf16.mxu0 %v441_v53  ;;  %2239 = vmatprep.mubr.msk.f32.mxu1 %vm791_vm0, %v785_v17  ;;  %v1486_v53 = vld [vmem:[%s2570_s15 + $0x68] sm:$0xff] }
  0x52   : > { %1584 = vperm.xlu1 %2324, %v1482_v49   ;;  %1579 = vperm.xlu0 %2323, %v1481_v50  }
  0x54   : > { %2240 = vmatmul.mubr.msk.f32.gmra.mxu1 %vm791_vm0, %v786_v19  ;;  %v1504_v19 = vld [vmem:[%s2570_s15 + $0xf8] sm:$0xff] }
  0x56   : > { %1594 = vperm.xlu1 %2324, %v1484_v51   ;;  %1589 = vperm.xlu0 %2323, %v1483_v52  }
  0x58   : > { %663 = vmatmul.mubr.bf16.gmra.mxu0 %v440_v59  ;;  %v1492_v59 = vld [vmem:[%s2570_s15 + $0x98] sm:$0xff] }
  0x59   : > { %670 = vmatprep.mubr.bf16.mxu0 %v443_v60  ;;  %v1491_v60 = vld [vmem:[%s2570_s15 + $0x90] sm:$0xff] }
  0x5a   : > { %1604 = vperm.xlu1 %2324, %v1486_v53   ;;  %1599 = vperm.xlu0 %2323, %v1485_v54  }
  0x5e   : > { %1614 = vperm.xlu1 %2324, %v1488_v55   ;;  %1609 = vperm.xlu0 %2323, %v1487_v56  }
  0x60   : > { %671 = vmatmul.mubr.bf16.gmra.mxu0 %v442_v2 }
  0x61   : > { %678 = vmatprep.mubr.bf16.mxu0 %v445_v3 }
  0x62   : > { %1624 = vperm.xlu1 %2324, %v1490_v57   ;;  %1619 = vperm.xlu0 %2323, %v1489_v58  }
  0x66   : > { %1634 = vperm.xlu1 %2324, %v1492_v59   ;;  %1629 = vperm.xlu0 %2323, %v1491_v60  }
  0x68   : > { %679 = vmatmul.mubr.bf16.gmra.mxu0 %v444_v9  ;;  %v1500_v9 = vld [vmem:[%s2570_s15 + $0xd8] sm:$0xff] }
  0x69   : > { %686 = vmatprep.mubr.bf16.mxu0 %v447_v10  ;;  %v1499_v10 = vld [vmem:[%s2570_s15 + $0xd0] sm:$0xff] }
  0x6a   : > { %1644 = vperm.xlu1 %2324, %v1494_v61   ;;  %1639 = vperm.xlu0 %2323, %v1493_v62  }
  0x6e   : > { %1654 = vperm.xlu1 %2324, %v1496_v0   ;;  %1649 = vperm.xlu0 %2323, %v1495_v1  }
  0x70   : > { %687 = vmatmul.mubr.bf16.gmra.mxu0 %v446_v12 }
  0x71   : > { %694 = vmatprep.mubr.bf16.mxu0 %v449_v13 }
  0x72   : > { %1664 = vperm.xlu1 %2324, %v1498_v4   ;;  %1659 = vperm.xlu0 %2323, %v1497_v5  }
  0x76   : > { %1674 = vperm.xlu1 %2324, %v1500_v9   ;;  %1669 = vperm.xlu0 %2323, %v1499_v10  }
  0x78   : > { %695 = vmatmul.mubr.bf16.gmra.mxu0 %v448_v20  ;;  %v1503_v20 = vld [vmem:[%s2570_s15 + $0xf0] sm:$0xff] }
  0x79   : > { %702 = vmatprep.mubr.bf16.mxu0 %v451_v22 }
  0x7a   : > { %1684 = vperm.xlu1 %2324, %v1502_v14   ;;  %1679 = vperm.xlu0 %2323, %v1501_v15  }
  0x7e   : > { %1694 = vperm.xlu1 %2324, %v1504_v19   ;;  %1689 = vperm.xlu0 %2323, %v1503_v20  }
  0x80   : > { %703 = vmatmul.mubr.bf16.gmra.mxu0 %v450_v25 }
  0x81   : > { %710 = vmatprep.mubr.bf16.mxu0 %v453_v26 }
  0x88   : > { %711 = vmatmul.mubr.bf16.gmra.mxu0 %v452_v28 }
  0x89   : > { %718 = vmatprep.mubr.bf16.mxu0 %v455_v29 }
  0x90   : > { %719 = vmatmul.mubr.bf16.gmra.mxu0 %v454_v31 }
  0x91   : > { %726 = vmatprep.mubr.bf16.mxu0 %v457_v32 }
  0x98   : > { %727 = vmatmul.mubr.bf16.gmra.mxu0 %v456_v34 }
  0x99   : > { %734 = vmatprep.mubr.bf16.mxu0 %v459_v35 }
  0xa0   : > { %735 = vmatmul.mubr.bf16.gmra.mxu0 %v458_v37 }
  0xa1   : > { %742 = vmatprep.mubr.bf16.mxu0 %v461_v38 }
  0xa8   : > { %743 = vmatmul.mubr.bf16.gmra.mxu0 %v460_v39 }
  0xd8   : > { %v2622_v0 = vpop.f32.mrf.mxu1 }
  0xda   : > { %v2625_v4 = vpop.f32.mrf.mxu1 }
  0xf0   : > { %v2018_v63 = vpop.f32.mrf.mxu0 }
  0xf2   : > { %v2019_v2 = vpop.f32.mrf.mxu0 }
  0xf3   : > { %v2020_v3 = vadd.f32 %v2019_v2, %v2018_v63 }
  0xf4   : > { %v2021_v6 = vpop.f32.mrf.mxu0 }
  0xf5   : > { %2250 = vmatprep.mubr.msk.f32.mxu1 %vm791_vm0, %v2020_v3 }
  0xf6   : > { %v2022_v7 = vpop.f32.mrf.mxu0 }
  0xf7   : > { %v2023_v8 = vadd.f32 %v2022_v7, %v2021_v6 }
  0xf8   : > { %v2024_v11 = vpop.f32.mrf.mxu0 }
  0xf9   : > { %2251 = vmatmul.mubr.msk.f32.vlgmr.msra.gmra.mxu1 %vm791_vm0, %v2023_v8  ;;  %v2628_v8 = vpop.f32.mrf.mxu1 }
  0xfa   : > { %v2025_v12 = vpop.f32.mrf.mxu0 }
  0xfb   : > { %v2026_v13 = vadd.f32 %v2025_v12, %v2024_v11  ;;  %v2631_v12 = vpop.f32.mrf.mxu1 }
  0xfc   : > { %v2027_v16 = vpop.f32.mrf.mxu0 }
  0xfd   : > { %2253 = vmatprep.mubr.msk.f32.mxu1 %vm791_vm0, %v2026_v13 }
  0xfe   : > { %v2028_v17 = vpop.f32.mrf.mxu0 }
  0xff   : > { %v2029_v18 = vadd.f32 %v2028_v17, %v2027_v16  ;;  %v2634_v16 = vpop.f32.mrf.mxu1 }
 0x100   : > { %v2030_v21 = vpop.f32.mrf.mxu0 }
 0x101   : > { %2254 = vmatmul.mubr.msk.f32.gmra.mxu1 %vm791_vm0, %v2029_v18  ;;  %v2637_v20 = vpop.f32.mrf.mxu1 }
 0x102   : > { %v2031_v22 = vpop.f32.mrf.mxu0 }
 0x103   : > { %v2032_v23 = vadd.f32 %v2031_v22, %v2030_v21 }
 0x104   : > { %v2033_v24 = vpop.f32.mrf.mxu0 }
 0x105   : > { %2256 = vmatprep.mubr.msk.f32.mxu1 %vm791_vm0, %v2032_v23 }
 0x106   : > { %v2034_v25 = vpop.f32.mrf.mxu0 }
 0x107   : > { %v2035_v26 = vadd.f32 %v2034_v25, %v2033_v24  ;;  %v2640_v24 = vpop.f32.mrf.mxu1 }
 0x108   : > { %v2036_v27 = vpop.f32.mrf.mxu0 }
 0x109   : > { %2257 = vmatmul.mubr.msk.f32.gmra.mxu1 %vm791_vm0, %v2035_v26 }
 0x10a   : > { %v2037_v28 = vpop.f32.mrf.mxu0 }
 0x10b   : > { %v2038_v29 = vadd.f32 %v2037_v28, %v2036_v27  ;;  %v2643_v28 = vpop.f32.mrf.mxu1 }
 0x10c   : > { %v2039_v30 = vpop.f32.mrf.mxu0 }
 0x10d   : > { %2259 = vmatprep.mubr.msk.f32.mxu1 %vm791_vm0, %v2038_v29 }
 0x10e   : > { %v2040_v31 = vpop.f32.mrf.mxu0 }
 0x10f   : > { %v2041_v32 = vadd.f32 %v2040_v31, %v2039_v30 }
 0x110   : > { %v2042_v33 = vpop.f32.mrf.mxu0 }
 0x111   : > { %2260 = vmatmul.mubr.msk.f32.gmra.mxu1 %vm791_vm0, %v2041_v32  ;;  %v2646_v32 = vpop.f32.mrf.mxu1 }
 0x112   : > { %v2043_v34 = vpop.f32.mrf.mxu0 }
 0x113   : > { %v2044_v35 = vadd.f32 %v2043_v34, %v2042_v33 }
 0x114   : > { %v2045_v36 = vpop.f32.mrf.mxu0 }
 0x115   : > { %2262 = vmatprep.mubr.msk.f32.mxu1 %vm791_vm0, %v2044_v35 }
 0x116   : > { %v2046_v37 = vpop.f32.mrf.mxu0 }
 0x117   : > { %v2047_v38 = vadd.f32 %v2046_v37, %v2045_v36  ;;  %v2649_v36 = vpop.f32.mrf.mxu1 }
 0x118   : > { %v2048_v39 = vpop.f32.mrf.mxu0 }
 0x119   : > { %2263 = vmatmul.mubr.msk.f32.gmra.mxu1 %vm791_vm0, %v2047_v38 }
 0x11a   : > { %v2049_v40 = vpop.f32.mrf.mxu0 }
 0x11b   : > { %v2050_v41 = vadd.f32 %v2049_v40, %v2048_v39  ;;  %v2652_v40 = vpop.f32.mrf.mxu1 }
 0x11c   : > { %v2051_v42 = vpop.f32.mrf.mxu0 }
 0x11d   : > { %2265 = vmatprep.mubr.msk.f32.mxu1 %vm791_vm0, %v2050_v41 }
 0x11e   : > { %v2052_v43 = vpop.f32.mrf.mxu0 }
 0x11f   : > { %v2053_v44 = vadd.f32 %v2052_v43, %v2051_v42 }
 0x120   : > { %v2054_v45 = vpop.f32.mrf.mxu0 }
 0x121   : > { %2266 = vmatmul.mubr.msk.f32.gmra.mxu1 %vm791_vm0, %v2053_v44  ;;  %v2655_v44 = vpop.f32.mrf.mxu1 }
 0x122   : > { %v2055_v46 = vpop.f32.mrf.mxu0 }
 0x123   : > { %v2056_v47 = vadd.f32 %v2055_v46, %v2054_v45 }
 0x124   : > { %v2057_v48 = vpop.f32.mrf.mxu0 }
 0x125   : > { %2268 = vmatprep.mubr.msk.f32.mxu1 %vm791_vm0, %v2056_v47 }
 0x126   : > { %v2058_v49 = vpop.f32.mrf.mxu0 }
 0x127   : > { %v2059_v50 = vadd.f32 %v2058_v49, %v2057_v48  ;;  %v2658_v48 = vpop.f32.mrf.mxu1 }
 0x128   : > { %v2060_v51 = vpop.f32.mrf.mxu0 }
 0x129   : > { %2269 = vmatmul.mubr.msk.f32.gmra.mxu1 %vm791_vm0, %v2059_v50 }
 0x12a   : > { %v2061_v52 = vpop.f32.mrf.mxu0 }
 0x12b   : > { %v2062_v53 = vadd.f32 %v2061_v52, %v2060_v51  ;;  %v2661_v52 = vpop.f32.mrf.mxu1 }
 0x12c   : > { %v2063_v54 = vpop.f32.mrf.mxu0 }
 0x12d   : > { %2271 = vmatprep.mubr.msk.f32.mxu1 %vm791_vm0, %v2062_v53 }
 0x12e   : > { %v2064_v55 = vpop.f32.mrf.mxu0 }
 0x12f   : > { %v2065_v56 = vadd.f32 %v2064_v55, %v2063_v54  ;;  %v2664_v55 = vpop.f32.mrf.mxu1 }
 0x130   : > { %v2066_v57 = vpop.f32.mrf.mxu0 }
 0x131   : > { %2272 = vmatmul.mubr.msk.f32.gmra.mxu1 %vm791_vm0, %v2065_v56  ;;  %v2666_v56 = vpop.f32.mrf.mxu1 }
 0x132   : > { %v2067_v58 = vpop.f32.mrf.mxu0 }
 0x133   : > { %v2068_v59 = vadd.f32 %v2067_v58, %v2066_v57  ;;  %v2668_v57 = vpop.f32.mrf.mxu1 }
 0x134   : > { %v2069_v60 = vpop.f32.mrf.mxu0 }
 0x135   : > { %2274 = vmatprep.mubr.msk.f32.mxu1 %vm791_vm0, %v2068_v59  ;;  %v2670_v58 = vpop.f32.mrf.mxu1 }
 0x136   : > { %v2070_v61 = vpop.f32.mrf.mxu0 }
 0x137   : > { %v2071_v62 = vadd.f32 %v2070_v61, %v2069_v60  ;;  %v2672_v59 = vpop.f32.mrf.mxu1 }
 0x138   : > { %v2072_v63 = vpop.f32.mrf.mxu0 }
 0x139   : > { %2275 = vmatmul.mubr.msk.f32.gmra.mxu1 %vm791_vm0, %v2071_v62  ;;  %v2674_v60 = vpop.f32.mrf.mxu1 }
 0x13a   : > { %v2073_v1 = vpop.f32.mrf.mxu0 }
 0x13b   : > { %v2074_v2 = vadd.f32 %v2073_v1, %v2072_v63  ;;  %v2676_v61 = vpop.f32.mrf.mxu1 }
 0x13c   : > { %v2075_v3 = vpop.f32.mrf.mxu0 }
 0x13d   : > { %2277 = vmatprep.mubr.msk.f32.mxu1 %vm791_vm0, %v2074_v2  ;;  %v2678_v62 = vpop.f32.mrf.mxu1 }
 0x13e   : > { %v2076_v5 = vpop.f32.mrf.mxu0 }
 0x13f   : > { %v2077_v6 = vadd.f32 %v2076_v5, %v2075_v3  ;;  %v2680_v63 = vpop.f32.mrf.mxu1 }
 0x140   : > { %v2078_v7 = vpop.f32.mrf.mxu0 }
 0x141   : > { %2278 = vmatmul.mubr.msk.f32.gmra.mxu1 %vm791_vm0, %v2077_v6  ;;  %v2682_v1 = vpop.f32.mrf.mxu1 }
 0x142   : > { %v2079_v9 = vpop.f32.mrf.mxu0 }
 0x143   : > { %v2080_v10 = vadd.f32 %v2079_v9, %v2078_v7  ;;  %v2684_v2 = vpop.f32.mrf.mxu1 }
 0x144   : > { %v2081_v11 = vpop.f32.mrf.mxu0 }
 0x145   : > { %2280 = vmatprep.mubr.msk.f32.mxu1 %vm791_vm0, %v2080_v10  ;;  %v2686_v3 = vpop.f32.mrf.mxu1 }
 0x146   : > { %v2082_v13 = vpop.f32.mrf.mxu0 }
 0x147   : > { %v2083_v14 = vadd.f32 %v2082_v13, %v2081_v11  ;;  %v2688_v5 = vpop.f32.mrf.mxu1  ;;  %v1540_v13 = vpop.permute.xlu0 %1539 }
 0x148   : > { %v2084_v15 = vpop.f32.mrf.mxu0 }
 0x149   : > { %2281 = vmatmul.mubr.msk.f32.gmra.mxu1 %vm791_vm0, %v2083_v14  ;;  %v2690_v6 = vpop.f32.mrf.mxu1 }
 0x14a   : > { %v2085_v17 = vpop.f32.mrf.mxu0 }
 0x14b   : > { %v2086_v18 = vadd.f32 %v2085_v17, %v2084_v15  ;;  %v2692_v7 = vpop.f32.mrf.mxu1  ;;  %v2703_v15 = vld [vmem:[%s2822_s6] ss:$0 sm:$0xff] }
 0x14c   : > { %v2087_v19 = vpop.f32.mrf.mxu0 }
 0x14d   : > { %2283 = vmatprep.mubr.msk.f32.mxu1 %vm791_vm0, %v2086_v18  ;;  %v2694_v9 = vpop.f32.mrf.mxu1 }
 0x14e   : > { %v2088_v21 = vpop.f32.mrf.mxu0 }
 0x14f   : > { %v2089_v22 = vadd.f32 %v2088_v21, %v2087_v19  ;;  %v2696_v10 = vpop.f32.mrf.mxu1 }
 0x150   : > { %v2090_v23 = vpop.f32.mrf.mxu0 }
 0x151   : > { %2284 = vmatmul.mubr.msk.f32.gmra.mxu1 %vm791_vm0, %v2089_v22  ;;  %v2698_v11 = vpop.f32.mrf.mxu1  ;;  %v1545_v22 = vpop.permute.xlu0 %1544 }
 0x152   : > { %v2091_v25 = vpop.f32.mrf.mxu0 }
 0x153   : > { %v2092_v26 = vadd.f32 %v2091_v25, %v2090_v23 }
 0x154   : > { %v2093_v27 = vpop.f32.mrf.mxu0 }
 0x155   : > { %2286 = vmatprep.mubr.msk.f32.mxu1 %vm791_vm0, %v2092_v26 }
 0x156   : > { %v2094_v29 = vpop.f32.mrf.mxu0 }
 0x157   : > { %v2095_v30 = vadd.f32 %v2094_v29, %v2093_v27  ;;  %v1550_v29 = vpop.permute.xlu1 %1549 }
 0x158   : > { %v2096_v31 = vpop.f32.mrf.mxu0 }
 0x159   : > { %2287 = vmatmul.mubr.msk.f32.gmra.mxu1 %vm791_vm0, %v2095_v30 }
 0x15a   : > { %v2097_v33 = vpop.f32.mrf.mxu0 }
 0x15b   : > { %v2098_v34 = vadd.f32 %v2097_v33, %v2096_v31 }
 0x15c   : > { %v2099_v35 = vpop.f32.mrf.mxu0 }
 0x15d   : > { %2289 = vmatprep.mubr.msk.f32.mxu1 %vm791_vm0, %v2098_v34 }
 0x15e   : > { %v2100_v37 = vpop.f32.mrf.mxu0 }
 0x15f   : > { %v2101_v38 = vadd.f32 %v2100_v37, %v2099_v35 }
 0x160   : > { %v2102_v39 = vpop.f32.mrf.mxu0 }
 0x161   : > { %2290 = vmatmul.mubr.msk.f32.gmra.mxu1 %vm791_vm0, %v2101_v38  ;;  %v1555_v38 = vpop.permute.xlu1 %1554 }
 0x162   : > { %v2103_v41 = vpop.f32.mrf.mxu0 }
 0x163   : > { %v2104_v42 = vadd.f32 %v2103_v41, %v2102_v39 }
 0x164   : > { %v2105_v43 = vpop.f32.mrf.mxu0 }
 0x165   : > { %2292 = vmatprep.mubr.msk.f32.mxu1 %vm791_vm0, %v2104_v42 }
 0x166   : > { %v2106_v45 = vpop.f32.mrf.mxu0 }
 0x167   : > { %v2107_v46 = vadd.f32 %v2106_v45, %v2105_v43 }
 0x168   : > { %v2108_v47 = vpop.f32.mrf.mxu0 }
 0x169   : > { %2293 = vmatmul.mubr.msk.f32.gmra.mxu1 %vm791_vm0, %v2107_v46 }
 0x16a   : > { %v2109_v49 = vpop.f32.mrf.mxu0 }
 0x16b   : > { %v2110_v50 = vadd.f32 %v2109_v49, %v2108_v47 }
 0x16c   : > { %v2111_v51 = vpop.f32.mrf.mxu0 }
 0x16d   : > { %2295 = vmatprep.mubr.msk.f32.mxu1 %vm791_vm0, %v2110_v50  ;;  %v1565_v50 = vpop.permute.xlu1 %1564 }
 0x16e   : > { %v2112_v53 = vpop.f32.mrf.mxu0 }
 0x16f   : > { %v2113_v54 = vadd.f32 %v2112_v53, %v2111_v51 }
 0x171   : > { %2296 = vmatmul.mubr.msk.f32.gmra.mxu1 %vm791_vm0, %v2113_v54  ;;  %v1560_v54 = vpop.permute.xlu0 %1559 }
 0x1b9   : > { %v2252_v14 = vpop.f32.mrf.mxu1 }
 0x1ba   : > { %v1281_v17 = vadd.f32 %v2252_v14, %v2622_v0 }
 0x1bb   : > { %v1275_v18 = vpop.f32.mrf.mxu1 }
 0x1bc   : > { %v1442_v19 = vadd.f32 %v2703_v15, %v1281_v17  ;;  %v1276_v21 = vadd.f32 %v1275_v18, %v2625_v4 }
 0x1be   : > { %v1441_v23 = vadd.f32 %v2703_v15, %v1276_v21  ;;  %v1506_v25 = vmax.f32 %v1442_v19, 0.0 }
 0x1c0   : > { %v1505_v26 = vmax.f32 %v1441_v23, 0.0  ;;  %v1698_v27 = vmul.f32 %v1545_v22, %v1506_v25  ;;  %v1575_v22 = vpop.permute.xlu1 %1574 }
 0x1c1   : > { %v2255_v0 = vpop.f32.mrf.mxu1 }
 0x1c2   : > { %v1697_v30 = vmul.f32 %v1540_v13, %v1505_v26  ;;  %1730 = vst [vmem:[%s2713_s20 + $0x8] sm:$0xff] %v1698_v27  ;;  %v1291_v4 = vadd.f32 %v2255_v0, %v2628_v8  ;;  %v1570_v26 = vpop.permute.xlu0 %1569 }
 0x1c3   : > { %v1285_v31 = vpop.f32.mrf.mxu1 }
 0x1c4   : > { %1729 = vst [vmem:[%s2713_s20] sm:$0xff] %v1697_v30  ;;  %v1444_v33 = vadd.f32 %v2703_v15, %v1291_v4  ;;  %v1286_v34 = vadd.f32 %v1285_v31, %v2631_v12 }
 0x1c6   : > { %v1443_v35 = vadd.f32 %v2703_v15, %v1286_v34  ;;  %v1508_v37 = vmax.f32 %v1444_v33, 0.0  ;;  %v1585_v33 = vpop.permute.xlu1 %1584 }
 0x1c8   : > { %v1507_v39 = vmax.f32 %v1443_v35, 0.0  ;;  %v1700_v41 = vmul.f32 %v1555_v38, %v1508_v37  ;;  %v1580_v37 = vpop.permute.xlu0 %1579 }
 0x1c9   : > { %v2258_v42 = vpop.f32.mrf.mxu1 }
 0x1ca   : > { %v1699_v43 = vmul.f32 %v1550_v29, %v1507_v39  ;;  %1732 = vst [vmem:[%s2713_s20 + $0x18] sm:$0xff] %v1700_v41  ;;  %v1301_v45 = vadd.f32 %v2258_v42, %v2634_v16 }
 0x1cb   : > { %v1295_v8 = vpop.f32.mrf.mxu1 }
 0x1cc   : > { %1731 = vst [vmem:[%s2713_s20 + $0x10] sm:$0xff] %v1699_v43  ;;  %v1446_v46 = vadd.f32 %v2703_v15, %v1301_v45  ;;  %v1296_v47 = vadd.f32 %v1295_v8, %v2637_v20  ;;  %v1595_v8 = vpop.permute.xlu1 %1594 }
 0x1ce   : > { %v1510_v12 = vmax.f32 %v1446_v46, 0.0  ;;  %v1445_v49 = vadd.f32 %v2703_v15, %v1296_v47 }
 0x1d0   : > { %v1702_v51 = vmul.f32 %v1565_v50, %v1510_v12  ;;  %v1509_v53 = vmax.f32 %v1445_v49, 0.0  ;;  %v1590_v12 = vpop.permute.xlu0 %1589 }
 0x1d1   : > { %v2261_v13 = vpop.f32.mrf.mxu1 }
 0x1d2   : > { %1734 = vst [vmem:[%s2713_s20 + $0x28] sm:$0xff] %v1702_v51  ;;  %v1701_v14 = vmul.f32 %v1560_v54, %v1509_v53  ;;  %v1311_v16 = vadd.f32 %v2261_v13, %v2640_v24 }
 0x1d3   : > { %v1305_v17 = vpop.f32.mrf.mxu1 }
 0x1d4   : > { %1733 = vst [vmem:[%s2713_s20 + $0x20] sm:$0xff] %v1701_v14  ;;  %v1448_v18 = vadd.f32 %v2703_v15, %v1311_v16  ;;  %v1306_v20 = vadd.f32 %v1305_v17, %v2643_v28  ;;  %v1605_v14 = vpop.permute.xlu1 %1604 }
 0x1d6   : > { %v1512_v19 = vmax.f32 %v1448_v18, 0.0  ;;  %v1447_v21 = vadd.f32 %v2703_v15, %v1306_v20  ;;  %v1600_v18 = vpop.permute.xlu0 %1599 }
 0x1d8   : > { %v1704_v23 = vmul.f32 %v1575_v22, %v1512_v19  ;;  %v1511_v25 = vmax.f32 %v1447_v21, 0.0 }
 0x1d9   : > { %v2264_v27 = vpop.f32.mrf.mxu1 }
 0x1da   : > { %1736 = vst [vmem:[%s2713_s20 + $0x38] sm:$0xff] %v1704_v23  ;;  %v1703_v29 = vmul.f32 %v1570_v26, %v1511_v25  ;;  %v1321_v24 = vadd.f32 %v2264_v27, %v2646_v32  ;;  %v1615_v26 = vpop.permute.xlu1 %1614 }
 0x1db   : > { %v1315_v0 = vpop.f32.mrf.mxu1 }
 0x1dc   : > { %1735 = vst [vmem:[%s2713_s20 + $0x30] sm:$0xff] %v1703_v29  ;;  %v1450_v30 = vadd.f32 %v2703_v15, %v1321_v24  ;;  %v1316_v28 = vadd.f32 %v1315_v0, %v2649_v36  ;;  %v1610_v24 = vpop.permute.xlu0 %1609 }
 0x1de   : > { %v1514_v4 = vmax.f32 %v1450_v30, 0.0  ;;  %v1449_v31 = vadd.f32 %v2703_v15, %v1316_v28 }
 0x1e0   : > { %v1706_v34 = vmul.f32 %v1585_v33, %v1514_v4  ;;  %v1513_v35 = vmax.f32 %v1449_v31, 0.0 }
 0x1e1   : > { %v2267_v38 = vpop.f32.mrf.mxu1 }
 0x1e2   : > { %1738 = vst [vmem:[%s2713_s20 + $0x48] sm:$0xff] %v1706_v34  ;;  %v1705_v39 = vmul.f32 %v1580_v37, %v1513_v35  ;;  %v1331_v32 = vadd.f32 %v2267_v38, %v2652_v40  ;;  %v1625_v34 = vpop.permute.xlu1 %1624  ;;  %v1620_v38 = vpop.permute.xlu0 %1619 }
 0x1e3   : > { %v1325_v41 = vpop.f32.mrf.mxu1 }
 0x1e4   : > { %1737 = vst [vmem:[%s2713_s20 + $0x40] sm:$0xff] %v1705_v39  ;;  %v1452_v42 = vadd.f32 %v2703_v15, %v1331_v32  ;;  %v1326_v36 = vadd.f32 %v1325_v41, %v2655_v44 }
 0x1e6   : > { %v1516_v43 = vmax.f32 %v1452_v42, 0.0  ;;  %v1451_v45 = vadd.f32 %v2703_v15, %v1326_v36 }
 0x1e8   : > { %v1708_v46 = vmul.f32 %v1595_v8, %v1516_v43  ;;  %v1515_v47 = vmax.f32 %v1451_v45, 0.0  ;;  %v1635_v45 = vpop.permute.xlu1 %1634 }
 0x1e9   : > { %v2270_v49 = vpop.f32.mrf.mxu1 }
 0x1ea   : > { %1740 = vst [vmem:[%s2713_s20 + $0x58] sm:$0xff] %v1708_v46  ;;  %v1707_v50 = vmul.f32 %v1590_v12, %v1515_v47  ;;  %v1341_v40 = vadd.f32 %v2270_v49, %v2658_v48  ;;  %v1630_v47 = vpop.permute.xlu0 %1629 }
 0x1eb   : > { %v1335_v51 = vpop.f32.mrf.mxu1 }
 0x1ec   : > { %1739 = vst [vmem:[%s2713_s20 + $0x50] sm:$0xff] %v1707_v50  ;;  %v1454_v53 = vadd.f32 %v2703_v15, %v1341_v40  ;;  %v1336_v44 = vadd.f32 %v1335_v51, %v2661_v52 }
 0x1ee   : > { %v1518_v54 = vmax.f32 %v1454_v53, 0.0  ;;  %v1453_v13 = vadd.f32 %v2703_v15, %v1336_v44  ;;  %v1645_v44 = vpop.permute.xlu1 %1644 }
 0x1f0   : > { %v1710_v16 = vmul.f32 %v1605_v14, %v1518_v54  ;;  %v1517_v17 = vmax.f32 %v1453_v13, 0.0  ;;  %v1640_v14 = vpop.permute.xlu0 %1639 }
 0x1f1   : > { %v2273_v20 = vpop.f32.mrf.mxu1 }
 0x1f2   : > { %1742 = vst [vmem:[%s2713_s20 + $0x68] sm:$0xff] %v1710_v16  ;;  %v1709_v19 = vmul.f32 %v1600_v18, %v1517_v17  ;;  %v1351_v48 = vadd.f32 %v2273_v20, %v2664_v55 }
 0x1f3   : > { %v1345_v21 = vpop.f32.mrf.mxu1 }
 0x1f4   : > { %1741 = vst [vmem:[%s2713_s20 + $0x60] sm:$0xff] %v1709_v19  ;;  %v1456_v22 = vadd.f32 %v2703_v15, %v1351_v48  ;;  %v1346_v52 = vadd.f32 %v1345_v21, %v2666_v56  ;;  %v1655_v21 = vpop.permute.xlu1 %1654 }
 0x1f6   : > { %v1520_v23 = vmax.f32 %v1456_v22, 0.0  ;;  %v1455_v25 = vadd.f32 %v2703_v15, %v1346_v52 }
 0x1f8   : > { %v1712_v27 = vmul.f32 %v1615_v26, %v1520_v23  ;;  %v1519_v29 = vmax.f32 %v1455_v25, 0.0  ;;  %v1650_v23 = vpop.permute.xlu0 %1649 }
 0x1f9   : > { %v2276_v0 = vpop.f32.mrf.mxu1 }
 0x1fa   : > { %1744 = vst [vmem:[%s2713_s20 + $0x78] sm:$0xff] %v1712_v27  ;;  %v1711_v30 = vmul.f32 %v1610_v24, %v1519_v29  ;;  %v1361_v55 = vadd.f32 %v2276_v0, %v2668_v57 }
 0x1fb   : > { %v1355_v28 = vpop.f32.mrf.mxu1 }
 0x1fc   : > { %1743 = vst [vmem:[%s2713_s20 + $0x70] sm:$0xff] %v1711_v30  ;;  %v1458_v4 = vadd.f32 %v2703_v15, %v1361_v55  ;;  %v1356_v56 = vadd.f32 %v1355_v28, %v2670_v58  ;;  %v1665_v30 = vpop.permute.xlu1 %1664 }
 0x1fe   : > { %v1522_v31 = vmax.f32 %v1458_v4, 0.0  ;;  %v1457_v33 = vadd.f32 %v2703_v15, %v1356_v56  ;;  %v1660_v4 = vpop.permute.xlu0 %1659 }
 0x200   : > { %v1714_v35 = vmul.f32 %v1625_v34, %v1522_v31  ;;  %v1521_v37 = vmax.f32 %v1457_v33, 0.0 }
 0x201   : > { %v2279_v39 = vpop.f32.mrf.mxu1 }
 0x202   : > { %1746 = vst [vmem:[%s2713_s20 + $0x88] sm:$0xff] %v1714_v35  ;;  %v1713_v32 = vmul.f32 %v1620_v38, %v1521_v37  ;;  %v1371_v57 = vadd.f32 %v2279_v39, %v2672_v59  ;;  %v1675_v38 = vpop.permute.xlu1 %1674 }
 0x203   : > { %v1365_v41 = vpop.f32.mrf.mxu1 }
 0x204   : > { %1745 = vst [vmem:[%s2713_s20 + $0x80] sm:$0xff] %v1713_v32  ;;  %v1460_v42 = vadd.f32 %v2703_v15, %v1371_v57  ;;  %v1366_v58 = vadd.f32 %v1365_v41, %v2674_v60  ;;  %v1670_v57 = vpop.permute.xlu0 %1669 }
 0x206   : > { %v1524_v36 = vmax.f32 %v1460_v42, 0.0  ;;  %v1459_v43 = vadd.f32 %v2703_v15, %v1366_v58 }
 0x208   : > { %v1716_v8 = vmul.f32 %v1635_v45, %v1524_v36  ;;  %v1523_v46 = vmax.f32 %v1459_v43, 0.0 }
 0x209   : > { %v2282_v12 = vpop.f32.mrf.mxu1 }
 0x20a   : > { %1748 = vst [vmem:[%s2713_s20 + $0x98] sm:$0xff] %v1716_v8  ;;  %v1715_v49 = vmul.f32 %v1630_v47, %v1523_v46  ;;  %v1381_v59 = vadd.f32 %v2282_v12, %v2676_v61  ;;  %v1685_v8 = vpop.permute.xlu1 %1684  ;;  %v1680_v12 = vpop.permute.xlu0 %1679 }
 0x20b   : > { %v1375_v50 = vpop.f32.mrf.mxu1 }
 0x20c   : > { %1747 = vst [vmem:[%s2713_s20 + $0x90] sm:$0xff] %v1715_v49  ;;  %v1462_v40 = vadd.f32 %v2703_v15, %v1381_v59  ;;  %v1376_v60 = vadd.f32 %v1375_v50, %v2678_v62 }
 0x20e   : > { %v1526_v51 = vmax.f32 %v1462_v40, 0.0  ;;  %v1461_v53 = vadd.f32 %v2703_v15, %v1376_v60 }
 0x210   : > { %v1718_v54 = vmul.f32 %v1645_v44, %v1526_v51  ;;  %v1525_v13 = vmax.f32 %v1461_v53, 0.0  ;;  %v1695_v53 = vpop.permute.xlu1 %1694 }
 0x211   : > { %v2285_v16 = vpop.f32.mrf.mxu1 }
 0x212   : > { %1750 = vst [vmem:[%s2713_s20 + $0xa8] sm:$0xff] %v1718_v54  ;;  %v1717_v17 = vmul.f32 %v1640_v14, %v1525_v13  ;;  %v1391_v61 = vadd.f32 %v2285_v16, %v2680_v63  ;;  %v1690_v13 = vpop.permute.xlu0 %1689 }
 0x213   : > { %v1385_v18 = vpop.f32.mrf.mxu1 }
 0x214   : > { %1749 = vst [vmem:[%s2713_s20 + $0xa0] sm:$0xff] %v1717_v17  ;;  %v1464_v20 = vadd.f32 %v2703_v15, %v1391_v61  ;;  %v1386_v62 = vadd.f32 %v1385_v18, %v2682_v1 }
 0x216   : > { %v1528_v19 = vmax.f32 %v1464_v20, 0.0  ;;  %v1463_v48 = vadd.f32 %v2703_v15, %v1386_v62 }
 0x218   : > { %v1720_v22 = vmul.f32 %v1655_v21, %v1528_v19  ;;  %v1527_v52 = vmax.f32 %v1463_v48, 0.0 }
 0x219   : > { %v2288_v25 = vpop.f32.mrf.mxu1 }
 0x21a   : > { %1752 = vst [vmem:[%s2713_s20 + $0xb8] sm:$0xff] %v1720_v22  ;;  %v1719_v26 = vmul.f32 %v1650_v23, %v1527_v52  ;;  %v1401_v63 = vadd.f32 %v2288_v25, %v2684_v2 }
 0x21b   : > { %v1395_v27 = vpop.f32.mrf.mxu1 }
 0x21c   : > { %1751 = vst [vmem:[%s2713_s20 + $0xb0] sm:$0xff] %v1719_v26  ;;  %v1466_v29 = vadd.f32 %v2703_v15, %v1401_v63  ;;  %v1396_v1 = vadd.f32 %v1395_v27, %v2686_v3 }
 0x21e   : > { %v1530_v24 = vmax.f32 %v1466_v29, 0.0  ;;  %v1465_v0 = vadd.f32 %v2703_v15, %v1396_v1 }
 0x220   : > { %v1722_v55 = vmul.f32 %v1665_v30, %v1530_v24  ;;  %v1529_v28 = vmax.f32 %v1465_v0, 0.0 }
 0x221   : > { %v2291_v56 = vpop.f32.mrf.mxu1 }
 0x222   : > { %1754 = vst [vmem:[%s2713_s20 + $0xc8] sm:$0xff] %v1722_v55  ;;  %v1721_v31 = vmul.f32 %v1660_v4, %v1529_v28  ;;  %v1411_v2 = vadd.f32 %v2291_v56, %v2688_v5 }
 0x223   : > { %v1405_v33 = vpop.f32.mrf.mxu1 }
 0x224   : > { %1753 = vst [vmem:[%s2713_s20 + $0xc0] sm:$0xff] %v1721_v31  ;;  %v1468_v34 = vadd.f32 %v2703_v15, %v1411_v2  ;;  %v1406_v3 = vadd.f32 %v1405_v33, %v2690_v6 }
 0x226   : > { %v1532_v35 = vmax.f32 %v1468_v34, 0.0  ;;  %v1467_v37 = vadd.f32 %v2703_v15, %v1406_v3 }
 0x228   : > { %v1724_v39 = vmul.f32 %v1675_v38, %v1532_v35  ;;  %v1531_v32 = vmax.f32 %v1467_v37, 0.0 }
 0x229   : > { %v2294_v41 = vpop.f32.mrf.mxu1 }
 0x22a   : > { %1756 = vst [vmem:[%s2713_s20 + $0xd8] sm:$0xff] %v1724_v39  ;;  %v1723_v42 = vmul.f32 %v1670_v57, %v1531_v32  ;;  %v1421_v5 = vadd.f32 %v2294_v41, %v2692_v7 }
 0x22b   : > { %v1415_v58 = vpop.f32.mrf.mxu1 }
 0x22c   : > { %1755 = vst [vmem:[%s2713_s20 + $0xd0] sm:$0xff] %v1723_v42  ;;  %v1470_v36 = vadd.f32 %v2703_v15, %v1421_v5  ;;  %v1416_v6 = vadd.f32 %v1415_v58, %v2694_v9 }
 0x22e   : > { %v1534_v43 = vmax.f32 %v1470_v36, 0.0  ;;  %v1469_v45 = vadd.f32 %v2703_v15, %v1416_v6 }
 0x230   : > { %v1726_v46 = vmul.f32 %v1685_v8, %v1534_v43  ;;  %v1533_v47 = vmax.f32 %v1469_v45, 0.0 }
 0x231   : > { %v2297_v49 = vpop.f32.mrf.mxu1 }
 0x232   : > { %1758 = vst [vmem:[%s2713_s20 + $0xe8] sm:$0xff] %v1726_v46  ;;  %v1725_v59 = vmul.f32 %v1680_v12, %v1533_v47  ;;  %v1431_v7 = vadd.f32 %v2297_v49, %v2696_v10 }
 0x233   : > { %v1425_v50 = vpop.f32.mrf.mxu1 }
 0x234   : > { %1757 = vst [vmem:[%s2713_s20 + $0xe0] sm:$0xff] %v1725_v59  ;;  %v1472_v40 = vadd.f32 %v2703_v15, %v1431_v7  ;;  %v1426_v9 = vadd.f32 %v1425_v50, %v2698_v11 }
 0x236   : > { %v1536_v60 = vmax.f32 %v1472_v40, 0.0  ;;  %v1471_v51 = vadd.f32 %v2703_v15, %v1426_v9 }
 0x238   : > { %v1728_v44 = vmul.f32 %v1695_v53, %v1536_v60  ;;  %v1535_v54 = vmax.f32 %v1471_v51, 0.0 }
 0x23a   : > { %1760 = vst [vmem:[%s2713_s20 + $0xf8] sm:$0xff] %v1728_v44  ;;  %v1727_v14 = vmul.f32 %v1690_v13, %v1535_v54 }
 0x23c   : > { %1759 = vst [vmem:[%s2713_s20 + $0xf0] sm:$0xff] %v1727_v14 }
 0x23d PF: > { %s17_s26 = sadd.s32 1, %s2363_s26   ;;  %s2824_s24 = smov %s2359_s25 }
 0x23e   : > { %p14_p5 = scmp.ge.s32.totalorder %s17_s26, 6   ;;  %s2825_s25 = smov %s2827_s27 }
 0x240   :  { %16 = sbr.rel (!%p14_p5) target bundleno = 2 (0x2), region = 87 }

</bundles_post_ra>
